<compile_context>
chip_gen: v7x
topology: tpu7x:2x2x1
jax: 0.10.0
libtpu: 0.0.40
codegen_flags: <defaults>
</compile_context>

<pallas_src>
import functools

import jax
import jax.numpy as jnp
import numpy as np
from jax import lax
from jax.experimental import pallas as pl
from jax.experimental.pallas import tpu as pltpu

# ----- loss-combination config (deterministic, set in-script) -----------------
W_BCE = 0.3
W_DICE = 0.7
DICE_SMOOTH = 1.0
assert abs((W_BCE + W_DICE) - 1.0) < 1e-12, "Weights sum is not 1!"

LANES = 128
SUBLANES = 8
SUB_ROWS = 256          # sub-slab processed per inner-loop iteration (32 vregs/intermediate)
MAX_BLOCK_ROWS = 8192   # DMA tile: 8192x128 f32 = 4 MiB preds (+2 MiB bf16 labels),
                        # x2 pipeline buffers ~= 12 MiB VMEM -> fits all generations
                        # (incl. v7x's 64 MiB) with vmem_limit_bytes raised below.


def _combo_loss_kernel(preds_ref, labels_ref, out_ref, *,
                       block_rows, sub_rows, num_steps, valid_last_rows):
    """Streams (block_rows, 128) tiles and accumulates four lane-resident (8, 128)
    partial sums directly in the resident output block:
      out[0] : sum of per-element BCE-with-logits terms
      out[1] : sum of sigmoid(x) * y
      out[2] : sum of sigmoid(x)
      out[3] : sum of y
    Cross-lane reduction and the weighted loss combination run on the tiny
    (4, 8, 128) result in the wrapper (no XLU / scalar work in the hot loop).
    """
    s = pl.program_id(0)

    @pl.when(s == 0)
    def _init():
        out_ref[...] = jnp.zeros_like(out_ref)

    n_sub = block_rows // sub_rows
    g = sub_rows // SUBLANES

    def sub_slab(base, carry, valid_rows):
        b, py, pp, yy = carry
        x = preds_ref[pl.ds(base, sub_rows), :].astype(jnp.float32)
        y = labels_ref[pl.ds(base, sub_rows), :].astype(jnp.float32)

        # One EUP exp shared between the BCE log-term and the stable sigmoid.
        e = jnp.exp(-jnp.abs(x))
        # Numerically-stable BCE with logits (matches torch.nn.BCEWithLogitsLoss):
        #   max(x, 0) - x*y + log1p(exp(-|x|))
        bce = jnp.maximum(x, 0.0) - x * y + jnp.log1p(e)
        # Stable sigmoid reusing e; approx reciprocal on the EUP + one Newton
        # refinement step on the VPU (r = r*(2 - d*r)) -> ~1e-8 relative error.
        one_pe = 1.0 + e
        r = pl.reciprocal(one_pe, approx=True)
        r = r * (2.0 - one_pe * r)
        p = jnp.where(x >= 0.0, 1.0, e) * r

        if valid_rows is not None:
            # Only the (partial) last grid step pays for this mask: zero out the
            # unspecified rows of the trailing partial block. Row-index compare
            # (not flat element index) so there is no int32 overflow risk.
            rloc = base + lax.broadcasted_iota(jnp.int32, (sub_rows, LANES), 0)
            keep = rloc < valid_rows
            zero = jnp.float32(0.0)
            bce = jnp.where(keep, bce, zero)
            p = jnp.where(keep, p, zero)
            y = jnp.where(keep, y, zero)

        # Per-sub-slab reduction stays on the VPU: fold onto one (8, 128) vreg
        # per accumulator (reduction over the leading, non-tiled axis only).
        b = b + bce.reshape(g, SUBLANES, LANES).sum(axis=0)
        py = py + (p * y).reshape(g, SUBLANES, LANES).sum(axis=0)
        pp = pp + p.reshape(g, SUBLANES, LANES).sum(axis=0)
        yy = yy + y.reshape(g, SUBLANES, LANES).sum(axis=0)
        return b, py, pp, yy

    def accumulate(valid_rows):
        zeros = jnp.zeros((SUBLANES, LANES), jnp.float32)
        init = (zeros, zeros, zeros, zeros)
        if n_sub == 1:
            b, py, pp, yy = sub_slab(0, init, valid_rows)
        else:
            def body(i, carry):
                base = pl.multiple_of(i * sub_rows, sub_rows)
                return sub_slab(base, carry, valid_rows)
            b, py, pp, yy = lax.fori_loop(0, n_sub, body, init, unroll=True)
        # Direct sub-slice accumulates into the resident output block
        # (no stack/reshape relayout, minimal vst pressure).
        out_ref[0] += b
        out_ref[1] += py
        out_ref[2] += pp
        out_ref[3] += yy

    has_partial = valid_last_rows is not None
    if not has_partial:
        accumulate(None)
    elif num_steps == 1:
        accumulate(valid_last_rows)
    else:
        last = num_steps - 1

        @pl.when(s != last)
        def _full():
            accumulate(None)

        @pl.when(s == last)
        def _partial():
            accumulate(valid_last_rows)


def _round_up(a: int, b: int) -> int:
    return (a + b - 1) // b * b


def combination_loss(preds, labels):
    """preds: logits; labels: binary masks; identical shapes (any dtype).
    Returns scalar f32 = 0.3 * BCEWithLogits + 0.7 * SoftDice(sigmoid(preds), labels).
    """
    assert preds.shape == labels.shape
    n = int(np.prod(preds.shape))

    # Keep inputs in their incoming dtype (the kernel casts per sub-slab); narrow
    # label dtypes (bf16/uint8 binary masks) directly cut HBM traffic.
    preds_flat = preds.reshape(-1)
    labels_flat = labels.reshape(-1)

    rows_main = n // LANES
    n_main = rows_main * LANES

    if rows_main > 0:
        if n_main == n:
            preds2d = preds_flat.reshape(rows_main, LANES)
            labels2d = labels_flat.reshape(rows_main, LANES)
        else:
            preds2d = preds_flat[:n_main].reshape(rows_main, LANES)
            labels2d = labels_flat[:n_main].reshape(rows_main, LANES)

        # Tile sizing: as large as MAX_BLOCK_ROWS; everything stays a multiple of
        # the (8, 128) vreg tile; the trailing partial block is masked in-kernel.
        rows8 = _round_up(rows_main, SUBLANES)
        if rows8 <= SUB_ROWS:
            block_rows = rows8
            sub_rows = block_rows
        else:
            block_rows = min(MAX_BLOCK_ROWS, _round_up(rows_main, SUB_ROWS))
            sub_rows = SUB_ROWS
        num_steps = -(-rows_main // block_rows)
        rem = rows_main - (num_steps - 1) * block_rows
        valid_last_rows = None if rem == block_rows else rem

        kernel = functools.partial(
            _combo_loss_kernel,
            block_rows=block_rows,
            sub_rows=sub_rows,
            num_steps=num_steps,
            valid_last_rows=valid_last_rows,
        )

        partials = pl.pallas_call(
            kernel,
            out_shape=jax.ShapeDtypeStruct((4, SUBLANES, LANES), jnp.float32),
            grid_spec=pltpu.PrefetchScalarGridSpec(
                num_scalar_prefetch=0,
                grid=(num_steps,),
                in_specs=[
                    pl.BlockSpec((block_rows, LANES), lambda s: (s, 0)),
                    pl.BlockSpec((block_rows, LANES), lambda s: (s, 0)),
                ],
                out_specs=pl.BlockSpec((4, SUBLANES, LANES), lambda s: (0, 0, 0)),
            ),
            compiler_params=pltpu.CompilerParams(
                dimension_semantics=("arbitrary",),
                vmem_limit_bytes=32 * 1024 * 1024,
            ),
        )(preds2d, labels2d)

        sums = jnp.sum(partials, axis=(1, 2))  # (4,)
    else:
        sums = jnp.zeros((4,), jnp.float32)

    # <128-element tail (only when n is not a multiple of 128): plain-JAX epilogue.
    if n_main != n:
        xt = preds_flat[n_main:].astype(jnp.float32)
        yt = labels_flat[n_main:].astype(jnp.float32)
        et = jnp.exp(-jnp.abs(xt))
        bce_t = jnp.sum(jnp.maximum(xt, 0.0) - xt * yt + jnp.log1p(et))
        pt = jnp.where(xt >= 0.0, 1.0, et) / (1.0 + et)
        sums = sums + jnp.stack(
            [bce_t, jnp.sum(pt * yt), jnp.sum(pt), jnp.sum(yt)])

    # Tiny epilogue: weighted combination of the two member losses.
    bce_mean = sums[0] / jnp.float32(n)
    dice = 1.0 - (2.0 * sums[1] + DICE_SMOOTH) / (sums[2] + sums[3] + DICE_SMOOTH)
    return jnp.float32(W_BCE) * bce_mean + jnp.float32(W_DICE) * dice


def _reference_loss(preds, labels):
    x = preds.astype(jnp.float32)
    y = labels.astype(jnp.float32)
    bce = jnp.mean(jnp.maximum(x, 0.0) - x * y + jnp.log1p(jnp.exp(-jnp.abs(x))))
    p = jax.nn.sigmoid(x)
    dice = 1.0 - (2.0 * jnp.sum(p * y) + DICE_SMOOTH) / (
        jnp.sum(p) + jnp.sum(y) + DICE_SMOOTH
    )
    return W_BCE * bce + W_DICE * dice


if __name__ == "__main__":
    key = jax.random.PRNGKey(0)
    k1, k2 = jax.random.split(key)
    # NCHW, small shapes: batch=2, channels=4, spatial=16x16
    preds = jax.random.normal(k1, (2, 4, 16, 16), dtype=jnp.float32)              # logits
    labels = (jax.random.uniform(k2, (2, 4, 16, 16)) > 0.5).astype(jnp.bfloat16)  # binary masks

    loss = combination_loss(preds, labels)
    jax.block_until_ready(loss)

    ref = _reference_loss(preds, labels)
    np.testing.assert_allclose(np.asarray(loss), np.asarray(ref), rtol=1e-5, atol=1e-5)
    print("KERNEL_OK")
</pallas_src>

<mosaic_0001>
module attributes {stable_mosaic.version = 11 : i64} {
  func.func @_combo_loss_kernel(%arg0: i32, %arg1: memref<16x128xf32, #tpu.memory_space<vmem>>, %arg2: memref<16x128xbf16, #tpu.memory_space<vmem>>, %arg3: memref<4x8x128xf32, #tpu.memory_space<vmem>>) attributes {dimension_semantics = [#tpu.dimension_semantics<arbitrary>], iteration_bounds = array<i64: 1>, scalar_prefetch = 0 : i64, scratch_operands = 0 : i64, tpu.core_type = #tpu.core_type<tc>, window_params = [{transform_indices = @transform_0, window_bounds = array<i64: 16, 128>}, {transform_indices = @transform_1, window_bounds = array<i64: 16, 128>}, {pipeline_mode = #tpu.pipeline_mode<synchronous>, transform_indices = @transform_2, window_bounds = array<i64: 4, 8, 128>}]} {
    %c0_i32 = arith.constant 0 : i32
    %0 = arith.cmpi eq, %arg0, %c0_i32 : i32
    %1 = arith.extui %0 : i1 to i32
    %c0_i32_0 = arith.constant 0 : i32
    %2 = arith.cmpi ne, %1, %c0_i32_0 : i32
    scf.if %2 {
      %cst_35 = arith.constant 0.000000e+00 : f32
      %66 = vector.broadcast %cst_35 : f32 to vector<4x8x128xf32>
      %c0_36 = arith.constant 0 : index
      %c0_37 = arith.constant 0 : index
      %c0_38 = arith.constant 0 : index
      %67 = vector.load %arg3[%c0_36, %c0_37, %c0_38] : memref<4x8x128xf32, #tpu.memory_space<vmem>>, vector<4x8x128xf32>
      tpu.vector_store %arg3[%c0_36, %c0_37, %c0_38], %66 {strides = array<i32>} : memref<4x8x128xf32, #tpu.memory_space<vmem>>, vector<4x8x128xf32>,
    } else {
    }
    %cst = arith.constant 0.000000e+00 : f32
    %3 = vector.broadcast %cst : f32 to vector<8x128xf32>
    %c0 = arith.constant 0 : index
    %c0_1 = arith.constant 0 : index
    %4 = vector.load %arg1[%c0, %c0_1] : memref<16x128xf32, #tpu.memory_space<vmem>>, vector<16x128xf32>
    %c0_2 = arith.constant 0 : index
    %c0_3 = arith.constant 0 : index
    %5 = vector.load %arg2[%c0_2, %c0_3] : memref<16x128xbf16, #tpu.memory_space<vmem>>, vector<16x128xbf16>
    %6 = arith.extf %5 : vector<16x128xbf16> to vector<16x128xf32>
    %7 = math.absf %4 : vector<16x128xf32>
    %cst_4 = arith.constant 0.000000e+00 : f32
    %8 = vector.broadcast %cst_4 : f32 to vector<16x128xf32>
    %9 = arith.subf %8, %7 : vector<16x128xf32>
    %10 = math.exp %9 : vector<16x128xf32>
    %cst_5 = arith.constant 0.000000e+00 : f32
    %11 = vector.broadcast %cst_5 : f32 to vector<16x128xf32>
    %12 = arith.maximumf %4, %11 : vector<16x128xf32>
    %13 = arith.mulf %4, %6 : vector<16x128xf32>
    %14 = arith.subf %12, %13 : vector<16x128xf32>
    %15 = math.log1p %10 : vector<16x128xf32>
    %16 = arith.addf %14, %15 : vector<16x128xf32>
    %cst_6 = arith.constant 1.000000e+00 : f32
    %17 = vector.broadcast %cst_6 : f32 to vector<16x128xf32>
    %18 = arith.addf %17, %10 : vector<16x128xf32>
    %19 = tpu.reciprocal %18 {approx = true} : vector<16x128xf32> -> vector<16x128xf32>
    %20 = arith.mulf %18, %19 : vector<16x128xf32>
    %cst_7 = arith.constant 2.000000e+00 : f32
    %21 = vector.broadcast %cst_7 : f32 to vector<16x128xf32>
    %22 = arith.subf %21, %20 : vector<16x128xf32>
    %23 = arith.mulf %19, %22 : vector<16x128xf32>
    %cst_8 = arith.constant 0.000000e+00 : f32
    %24 = vector.broadcast %cst_8 : f32 to vector<16x128xf32>
    %25 = arith.cmpf oge, %4, %24 : vector<16x128xf32>
    %cst_9 = arith.constant 1.000000e+00 : f32
    %26 = vector.broadcast %cst_9 : f32 to vector<16x128xf32>
    %27 = arith.select %25, %26, %10 : vector<16x128xi1>, vector<16x128xf32>
    %28 = arith.mulf %27, %23 : vector<16x128xf32>
    %29 = vector.shape_cast %16 : vector<16x128xf32> to vector<2x8x128xf32>
    %cst_10 = arith.constant dense<0.000000e+00> : vector<8x128xf32>
    %30 = vector.multi_reduction <add>, %29, %cst_10 [0] : vector<2x8x128xf32> to vector<8x128xf32>
    %31 = arith.addf %3, %30 : vector<8x128xf32>
    %32 = arith.mulf %28, %6 : vector<16x128xf32>
    %33 = vector.shape_cast %32 : vector<16x128xf32> to vector<2x8x128xf32>
    %cst_11 = arith.constant dense<0.000000e+00> : vector<8x128xf32>
    %34 = vector.multi_reduction <add>, %33, %cst_11 [0] : vector<2x8x128xf32> to vector<8x128xf32>
    %35 = arith.addf %3, %34 : vector<8x128xf32>
    %36 = vector.shape_cast %28 : vector<16x128xf32> to vector<2x8x128xf32>
    %cst_12 = arith.constant dense<0.000000e+00> : vector<8x128xf32>
    %37 = vector.multi_reduction <add>, %36, %cst_12 [0] : vector<2x8x128xf32> to vector<8x128xf32>
    %38 = arith.addf %3, %37 : vector<8x128xf32>
    %39 = vector.shape_cast %6 : vector<16x128xf32> to vector<2x8x128xf32>
    %cst_13 = arith.constant dense<0.000000e+00> : vector<8x128xf32>
    %40 = vector.multi_reduction <add>, %39, %cst_13 [0] : vector<2x8x128xf32> to vector<8x128xf32>
    %41 = arith.addf %3, %40 : vector<8x128xf32>
    %c0_14 = arith.constant 0 : index
    %c0_15 = arith.constant 0 : index
    %c0_16 = arith.constant 0 : index
    %42 = vector.load %arg3[%c0_14, %c0_15, %c0_16] : memref<4x8x128xf32, #tpu.memory_space<vmem>>, vector<1x8x128xf32>
    %43 = vector.shape_cast %42 : vector<1x8x128xf32> to vector<8x128xf32>
    %44 = arith.addf %43, %31 : vector<8x128xf32>
    %c0_17 = arith.constant 0 : index
    %c0_18 = arith.constant 0 : index
    %c0_19 = arith.constant 0 : index
    %45 = vector.load %arg3[%c0_17, %c0_18, %c0_19] : memref<4x8x128xf32, #tpu.memory_space<vmem>>, vector<1x8x128xf32>
    %46 = vector.shape_cast %45 : vector<1x8x128xf32> to vector<8x128xf32>
    %47 = vector.shape_cast %44 : vector<8x128xf32> to vector<1x8x128xf32>
    tpu.vector_store %arg3[%c0_17, %c0_18, %c0_19], %47 {strides = array<i32>} : memref<4x8x128xf32, #tpu.memory_space<vmem>>, vector<1x8x128xf32>,
    %c1 = arith.constant 1 : index
    %c0_20 = arith.constant 0 : index
    %c0_21 = arith.constant 0 : index
    %48 = vector.load %arg3[%c1, %c0_20, %c0_21] : memref<4x8x128xf32, #tpu.memory_space<vmem>>, vector<1x8x128xf32>
    %49 = vector.shape_cast %48 : vector<1x8x128xf32> to vector<8x128xf32>
    %50 = arith.addf %49, %35 : vector<8x128xf32>
    %c1_22 = arith.constant 1 : index
    %c0_23 = arith.constant 0 : index
    %c0_24 = arith.constant 0 : index
    %51 = vector.load %arg3[%c1_22, %c0_23, %c0_24] : memref<4x8x128xf32, #tpu.memory_space<vmem>>, vector<1x8x128xf32>
    %52 = vector.shape_cast %51 : vector<1x8x128xf32> to vector<8x128xf32>
    %53 = vector.shape_cast %50 : vector<8x128xf32> to vector<1x8x128xf32>
    tpu.vector_store %arg3[%c1_22, %c0_23, %c0_24], %53 {strides = array<i32>} : memref<4x8x128xf32, #tpu.memory_space<vmem>>, vector<1x8x128xf32>,
    %c2 = arith.constant 2 : index
    %c0_25 = arith.constant 0 : index
    %c0_26 = arith.constant 0 : index
    %54 = vector.load %arg3[%c2, %c0_25, %c0_26] : memref<4x8x128xf32, #tpu.memory_space<vmem>>, vector<1x8x128xf32>
    %55 = vector.shape_cast %54 : vector<1x8x128xf32> to vector<8x128xf32>
    %56 = arith.addf %55, %38 : vector<8x128xf32>
    %c2_27 = arith.constant 2 : index
    %c0_28 = arith.constant 0 : index
    %c0_29 = arith.constant 0 : index
    %57 = vector.load %arg3[%c2_27, %c0_28, %c0_29] : memref<4x8x128xf32, #tpu.memory_space<vmem>>, vector<1x8x128xf32>
    %58 = vector.shape_cast %57 : vector<1x8x128xf32> to vector<8x128xf32>
    %59 = vector.shape_cast %56 : vector<8x128xf32> to vector<1x8x128xf32>
    tpu.vector_store %arg3[%c2_27, %c0_28, %c0_29], %59 {strides = array<i32>} : memref<4x8x128xf32, #tpu.memory_space<vmem>>, vector<1x8x128xf32>,
    %c3 = arith.constant 3 : index
    %c0_30 = arith.constant 0 : index
    %c0_31 = arith.constant 0 : index
    %60 = vector.load %arg3[%c3, %c0_30, %c0_31] : memref<4x8x128xf32, #tpu.memory_space<vmem>>, vector<1x8x128xf32>
    %61 = vector.shape_cast %60 : vector<1x8x128xf32> to vector<8x128xf32>
    %62 = arith.addf %61, %41 : vector<8x128xf32>
    %c3_32 = arith.constant 3 : index
    %c0_33 = arith.constant 0 : index
    %c0_34 = arith.constant 0 : index
    %63 = vector.load %arg3[%c3_32, %c0_33, %c0_34] : memref<4x8x128xf32, #tpu.memory_space<vmem>>, vector<1x8x128xf32>
    %64 = vector.shape_cast %63 : vector<1x8x128xf32> to vector<8x128xf32>
    %65 = vector.shape_cast %62 : vector<8x128xf32> to vector<1x8x128xf32>
    tpu.vector_store %arg3[%c3_32, %c0_33, %c0_34], %65 {strides = array<i32>} : memref<4x8x128xf32, #tpu.memory_space<vmem>>, vector<1x8x128xf32>,
    return
  }
  func.func @transform_0(%arg0: i32) -> (i32, i32) {
    %c0_i32 = arith.constant 0 : i32
    %c0_i32_0 = arith.constant 0 : i32
    return %arg0, %c0_i32 : i32, i32
  }
  func.func @transform_1(%arg0: i32) -> (i32, i32) {
    %c0_i32 = arith.constant 0 : i32
    %c0_i32_0 = arith.constant 0 : i32
    return %arg0, %c0_i32 : i32, i32
  }
  func.func @transform_2(%arg0: i32) -> (i32, i32, i32) {
    %c0_i32 = arith.constant 0 : i32
    %c0_i32_0 = arith.constant 0 : i32
    %c0_i32_1 = arith.constant 0 : i32
    %c0_i32_2 = arith.constant 0 : i32
    return %c0_i32, %c0_i32_0, %c0_i32_1 : i32, i32, i32
  }
}

</mosaic_0001>

<bundles_post_ra>
// kernel: tpu_custom_call.1
= control target key start
LH: loop header
LB: loop body
LE: loop exit
PB: predicated region body
PF: predicated region fallthrough
CT: control target
= control target key end

     0   :  { %7 = vsyncpa [#allocation3], 0  ;;  %s307_s0 = inlined_call_operand.hbm [shape: f32[16,128], index: 0, kind: input, shape index: {}]   ;;  %s308_s1 = inlined_call_operand.hbm [shape: bf16[16,128], index: 1, kind: input, shape index: {}]   ;;  %s309_s2 = inlined_call_operand.hbm [shape: f32[4,8,128], index: 2, kind: output, shape index: {}]  }
   0x1   :  { %8 = vsyncpa [#allocation6], 0 }
   0x2   :  { %9 = vsyncpa [#allocation4], 0  ;;  %s243_s9 = smov [#allocation2]   ;;  %s171_s13 = scalar_lea.hbm %s307_s0, 256 }
   0x3   :  { %s15_s10 = sshll.u32 %s243_s9, 4  ;;  %p172_p0 = scmp.ne.s32.totalorder %s307_s0, %s171_s13  ;;  %s16_s10 = int_to_ptr.vmem [resolvable:$true] %s15_s10 }
   0x4   :  { %p175_p1 = scmp.lt.u32.totalorder %s171_s13, %s307_s0 }
   0x6   :  { %p177_p2 = pnand %p175_p1, %p172_p0 }
   0x8   :  { %180 = shalt.err (!%p177_p2)
}
   0x9   :  { %s181_s18 = scalar_lea.vmem %s16_s10, 256  ;;  %p186_p4 = scmp.lt.s32.totalorder %s16_s10, %s16_s10 }
   0xa   :  { %p182_p3 = scmp.ne.s32.totalorder %s16_s10, %s181_s18  ;;  %p187_p5 = scmp.lt.s32.totalorder %s181_s18, %s181_s18 }
   0xc   :  { %p188_p6 = por %p187_p5, %p186_p4 }
   0xe   :  { %p189_p7 = pnand %p188_p6, %p182_p3 }
  0x10   :  { %192 = shalt.err (!%p189_p7)
}
  0x11   :  { %s244_s19 = smov 128   ;;  %s245_s20 = smov 8  }
  0x12   :  { %21 = dma.hbm_to_vmem [thread:$0]  %s307_s0, 256, %s16_s10, [#allocation3], %s244_s19, %s244_s19, %s245_s20  }
  0x13   :  { %s246_s23 = smov [#allocation5]   ;;  %s193_s27 = scalar_lea.hbm %s308_s1, 128 }
  0x14   :  { %s27_s24 = sshll.u32 %s246_s23, 4  ;;  %p194_p8 = scmp.ne.s32.totalorder %s308_s1, %s193_s27  ;;  %s28_s24 = int_to_ptr.vmem [resolvable:$true] %s27_s24 }
  0x15   :  { %p197_p9 = scmp.lt.u32.totalorder %s193_s27, %s308_s1 }
  0x17   :  { %p199_p10 = pnand %p197_p9, %p194_p8 }
  0x19   :  { %202 = shalt.err (!%p199_p10)
}
  0x1a   :  { %s203_s4 = scalar_lea.vmem %s28_s24, 128  ;;  %p208_p12 = scmp.lt.s32.totalorder %s28_s24, %s28_s24 }
  0x1b   :  { %p204_p11 = scmp.ne.s32.totalorder %s28_s24, %s203_s4  ;;  %p209_p13 = scmp.lt.s32.totalorder %s203_s4, %s203_s4 }
  0x1d   :  { %p210_p0 = por %p209_p13, %p208_p12 }
  0x1f   :  { %p211_p1 = pnand %p210_p0, %p204_p11 }
  0x21   :  { %214 = shalt.err (!%p211_p1)
}
  0x22   :  { %s247_s0 = smov 64   ;;  %s248_s5 = smov 4  }
  0x23   :  { %33 = dma.hbm_to_vmem [thread:$0]  %s308_s1, 128, %s28_s24, [#allocation6], %s247_s0, %s247_s0, %s248_s5  }
  0x24   :  { %237 = dma.done.wait [#allocation3], 256  }
  0x25   :  { %238 = vsyncadd [#allocation3], 4294967040 }
  0x26   :  { %239 = dma.done.wait [#allocation6], 128  }
  0x27   :  { %240 = vsyncadd [#allocation6], 4294967168  ;;  %v48_v0 = vld [vmem:[#allocation2] sm:$0xff]  ;;  %v49_v1 = vld [vmem:[#allocation2 + $0x8] sm:$0xff]  ;;  %s249_s1 = smov [#allocation7]  }
  0x28   :  { %v148_v2 = vld [vmem:[#allocation5] sm:$0xff]   ;;  %v54_v3 = vand.u32 2147483647, %v48_v0  ;;  %v55_v4 = vand.u32 2147483647, %v49_v1  ;;  %v62_v19 = vmax.f32 %v48_v0, 0.0 }
  0x29   :  { %v149_v5 = vunpack.c.l.bf16 %v148_v2  ;;  %v150_v6 = vunpack.c.h.bf16 %v148_v2  ;;  %v63_v23 = vmax.f32 %v49_v1, 0.0  ;;  %vm98_vm2 = vcmp.ge.f32.partialorder %v48_v0, 0.0  ;;  %s134_s8 = sshll.u32 %s249_s1, 4  ;;  %s135_s8 = int_to_ptr.vmem [resolvable:$true] %s134_s8 }
  0x2a   :  { %v56_v7 = vsub.f32 0.0, %v54_v3  ;;  %v57_v8 = vsub.f32 0.0, %v55_v4  ;;  %vm99_vm3 = vcmp.ge.f32.partialorder %v49_v1, 0.0  ;;  %s215_s9 = scalar_lea.vmem %s135_s8, 512  ;;  %p220_p3 = scmp.lt.s32.totalorder %s135_s8, %s135_s8 }
  0x2b   :  { %v112_v9 = vadd.f32 %v150_v6, %v149_v5  ;;  %v64_v20 = vmul.f32 %v149_v5, %v48_v0  ;;  %v65_v24 = vmul.f32 %v150_v6, %v49_v1  ;;  %p216_p2 = scmp.ne.s32.totalorder %s135_s8, %s215_s9  ;;  %p221_p4 = scmp.lt.s32.totalorder %s215_s9, %s215_s9 }
  0x2c   :  { %v58_v10 = vmul.f32 1.442695, %v56_v7  ;;  %v60_v11 = vmul.f32 1.442695, %v57_v8 }
  0x2d   :  { %128 = vst [vmem:[#allocation7 + $0x18] sm:$0xff] %v112_v9  ;;  %v66_v28 = vsub.f32 %v62_v19, %v64_v20  ;;  %v67_v31 = vsub.f32 %v63_v23, %v65_v24  ;;  %p222_p5 = por %p221_p4, %p220_p3 }
  0x2e   :  { %159 = vpow2.f32 %v58_v10 }
  0x2f   :  { %161 = vpow2.f32 %v60_v11  ;;  %p223_p6 = pnand %p222_p5, %p216_p2 }
  0x38   :  { %v160_v12 = vpop.eup %159 }
  0x39   :  { %v162_v13 = vpop.eup %161  ;;  %v68_v14 = vadd.f32 1.0, %v160_v12  ;;  %v71_v16 = vmul.f32 -0.5, %v160_v12  ;;  %v74_v21 = vand.u32 2147483647, %v160_v12  ;;  %v100_v44 = vsel %vm98_vm2, 1.0, %v160_v12 }
  0x3a   :  { %v77_v15 = vadd.f32 1.0, %v162_v13  ;;  %v80_v17 = vmul.f32 -0.5, %v162_v13  ;;  %v83_v25 = vand.u32 2147483647, %v162_v13  ;;  %v101_v47 = vsel %vm99_vm3, 1.0, %v162_v13 }
  0x3b   :  { %163 = vlog2.f32 %v68_v14  ;;  %v72_v18 = vadd.f32 1.0, %v71_v16  ;;  %vm75_vm0 = vcmp.lt.f32.partialorder %v74_v21, 0.0004427343 }
  0x3c   :  { %165 = vlog2.f32 %v77_v15  ;;  %v81_v22 = vadd.f32 1.0, %v80_v17  ;;  %vm84_vm1 = vcmp.lt.f32.partialorder %v83_v25, 0.0004427343 }
  0x3d   :  { %167 = vrcp.f32 %v68_v14  ;;  %v73_v26 = vmul.f32 %v160_v12, %v72_v18 }
  0x3e   :  { %169 = vrcp.f32 %v77_v15  ;;  %v82_v29 = vmul.f32 %v162_v13, %v81_v22 }
  0x45   :  { %v164_v27 = vpop.eup %163 }
  0x46   :  { %v166_v30 = vpop.eup %165  ;;  %v70_v32 = vmul.f32 0.6931472, %v164_v27 }
  0x47   :  { %v168_v33 = vpop.eup %167  ;;  %v79_v34 = vmul.f32 0.6931472, %v166_v30 }
  0x48   :  { %v170_v35 = vpop.eup %169  ;;  %v76_v36 = vsel %vm75_vm0, %v73_v26, %v70_v32  ;;  %v92_v37 = vmul.f32 %v168_v33, %v68_v14 }
  0x49   :  { %v85_v38 = vsel %vm84_vm1, %v82_v29, %v79_v34  ;;  %v86_v39 = vadd.f32 %v76_v36, %v66_v28  ;;  %v93_v40 = vmul.f32 %v170_v35, %v77_v15 }
  0x4a   :  { %v87_v41 = vadd.f32 %v85_v38, %v67_v31  ;;  %v94_v42 = vsub.f32 2.0, %v92_v37 }
  0x4b   :  { %v95_v43 = vsub.f32 2.0, %v93_v40 }
  0x4c   :  { %v104_v45 = vadd.f32 %v87_v41, %v86_v39  ;;  %v96_v46 = vmul.f32 %v168_v33, %v94_v42 }
  0x4d   :  { %v97_v48 = vmul.f32 %v170_v35, %v95_v43 }
  0x4e   :  { %v102_v49 = vmul.f32 %v100_v44, %v96_v46  ;;  %116 = vst [vmem:[#allocation7] sm:$0xff] %v104_v45 }
  0x4f   :  { %v103_v50 = vmul.f32 %v101_v47, %v97_v48 }
  0x50   :  { %v106_v51 = vmul.f32 %v149_v5, %v102_v49 }
  0x51   :  { %v107_v52 = vmul.f32 %v150_v6, %v103_v50  ;;  %v110_v53 = vadd.f32 %v103_v50, %v102_v49 }
  0x53   :  { %v108_v54 = vadd.f32 %v107_v52, %v106_v51  ;;  %124 = vst [vmem:[#allocation7 + $0x10] sm:$0xff] %v110_v53 }
  0x55   :  { %120 = vst [vmem:[#allocation7 + $0x8] sm:$0xff] %v108_v54 }
  0x56   :  { %226 = shalt.err (!%p223_p6)
}
  0x57   :  { %s227_s12 = scalar_lea.hbm %s309_s2, 512 }
  0x58   :  { %p228_p7 = scmp.ne.s32.totalorder %s309_s2, %s227_s12  ;;  %p231_p8 = scmp.lt.u32.totalorder %s227_s12, %s309_s2 }
  0x5a   :  { %p233_p9 = pnand %p231_p8, %p228_p7 }
  0x5c   :  { %236 = shalt.err (!%p233_p9)
}
  0x5d   :  { %140 = dma.vmem_to_hbm [thread:$0]  %s135_s8, 512, %s309_s2, [#allocation4], %s244_s19, %s244_s19, %s245_s20  }
  0x5e   :  { %241 = dma.done.wait [#allocation4], 512  }
  0x5f   :  { %242 = vsyncadd [#allocation4], 4294966784 }
  0x60   :  { %144 = vsyncpa [#allocation3], 1 }
  0x61   :  { %145 = vsyncpa [#allocation6], 1 }
  0x62   :  { %146 = vsyncpa [#allocation4], 1 }

</bundles_post_ra>
